<compile_context>
chip_gen: v7x
topology: tpu7x:2x2x1
jax: 0.10.0
libtpu: 0.0.40
codegen_flags: <defaults>
</compile_context>

<pallas_src>
import functools

import jax
import jax.numpy as jnp
from jax.experimental import pallas as pl
from jax.experimental.pallas import tpu as pltpu


def _pick_chunk(n, max_chunk=32):
    """Largest divisor of n that is <= max_chunk, preferring sublane (8) alignment."""
    for c in range(min(n, max_chunk), 0, -1):
        if n % c == 0 and c % 8 == 0:
            return c
    for c in range(min(n, max_chunk), 0, -1):
        if n % c == 0:
            return c
    return n


def semantic_kernel(chunk, gate_dtype, x_ref, word_ref, w1_ref, w2_ref,
                    w3a_ref, out_ref):
    # x_ref:    (1, N, C)   image features for this batch element (NHWC-flat)
    # word_ref: (K, Wd)     word embeddings
    # w1_ref:   (C, D)      fc_1 weight (pre-transposed)
    # w2_ref:   (Wd, D)     fc_2 weight (pre-transposed)
    # w3a_ref:  (1, D)      fused fc_3 @ fc_a vector (biases cancel in softmax)
    # out_ref:  (1, K, C)   graph_net_input for this batch element
    xf = x_ref[0]                                                    # (N, C)
    N = xf.shape[0]

    # fc_1 / fc_2 on the MXU, f32 accumulation.
    fwh = jnp.dot(xf, w1_ref[...], preferred_element_type=jnp.float32)       # (N, D)
    fwd = jnp.dot(word_ref[...], w2_ref[...],
                  preferred_element_type=jnp.float32)                        # (K, D)
    w3a = w3a_ref[0]                                                 # (D,)

    # Gate/tanh may run in bf16 on v6e/v7x; accumulation stays in f32.
    fwh_g = fwh.astype(gate_dtype)
    fwd_g = fwd.astype(gate_dtype)

    # k-major, spatially chunked: coef[k, n] = sum_d tanh(fwh[n]*fwd[k])[d] * w3a[d]
    num_chunks = N // chunk
    coef_chunks = []
    for ci in range(num_chunks):                 # static, fully unrolled
        n0 = ci * chunk                          # static, sublane-aligned slice
        fwh_c = fwh_g[n0:n0 + chunk, :]                              # (chunk, D)
        t = jnp.tanh(fwd_g[:, None, :] * fwh_c[None, :, :])          # (K, chunk, D)
        coef_chunks.append(
            jnp.sum(t.astype(jnp.float32) * w3a, axis=-1))           # (K, chunk)
    if num_chunks == 1:
        coef = coef_chunks[0]                                        # (K, N)
    else:
        coef = jnp.concatenate(coef_chunks, axis=-1)                 # (K, N)

    # softmax over spatial positions (lane axis), per class
    m = jnp.max(coef, axis=-1, keepdims=True)
    e = jnp.exp(coef - m)
    p = e / jnp.sum(e, axis=-1, keepdims=True)                       # (K, N)

    # attention-weighted spatial pooling: transpose-free (K, N) @ (N, C)
    pooled = jnp.dot(p, xf, preferred_element_type=jnp.float32)      # (K, C)
    out_ref[0] = pooled.astype(out_ref.dtype)


def semantic_forward(img_feature_map, word_features, params, *,
                     gate_dtype=jnp.float32):
    """img_feature_map: (B, C, S, S) NCHW; word_features: (K, Wd)."""
    B, C, S, _ = img_feature_map.shape
    K, Wd = word_features.shape
    D = params["w1"].shape[1]
    N = S * S

    # glue: NCHW -> NHWC, flatten spatial (row-major over h, w)
    x = jnp.transpose(img_feature_map, (0, 2, 3, 1)).reshape(B, N, C)

    # Fold fc_3 . fc_a into one D-vector.  The biases (b3, ba) are constant
    # across the spatial softmax axis and cancel exactly, so they are dropped.
    w3a = (params["w3"] @ params["wa"][0]).reshape(1, D).astype(jnp.float32)

    chunk = _pick_chunk(N)
    kernel = functools.partial(semantic_kernel, chunk, gate_dtype)

    return pl.pallas_call(
        kernel,
        out_shape=jax.ShapeDtypeStruct((B, K, C), jnp.float32),
        grid_spec=pltpu.PrefetchScalarGridSpec(
            num_scalar_prefetch=0,
            grid=(B,),
            in_specs=[
                pl.BlockSpec((1, N, C), lambda b: (b, 0, 0)),
                pl.BlockSpec((K, Wd), lambda b: (0, 0)),
                pl.BlockSpec((C, D), lambda b: (0, 0)),
                pl.BlockSpec((Wd, D), lambda b: (0, 0)),
                pl.BlockSpec((1, D), lambda b: (0, 0)),
            ],
            out_specs=pl.BlockSpec((1, K, C), lambda b: (b, 0, 0)),
        ),
        compiler_params=pltpu.CompilerParams(
            dimension_semantics=("parallel",)),
    )(x, word_features, params["w1"], params["w2"], w3a)


def semantic_reference(img_feature_map, word_features, params):
    """Pure-JAX replica of the PyTorch forward (full fc_3/fc_a path w/ biases)."""
    B, C, S, _ = img_feature_map.shape
    K = word_features.shape[0]
    D = params["w1"].shape[1]
    xf = jnp.transpose(img_feature_map, (0, 2, 3, 1)).reshape(B * S * S, C)
    fwh = xf @ params["w1"]                                   # (BN, D)
    fwd = word_features @ params["w2"]                        # (K, D)
    t = jnp.tanh(fwh[:, None, :] * fwd[None, :, :])           # (BN, K, D)
    lb = t.reshape(-1, D) @ params["w3"] + params["b3"][0]    # (BN*K, D)
    coef = lb @ params["wa"][0][:, None] + params["ba"][0, 0] # (BN*K, 1)
    coef = coef.reshape(B, S * S, K)
    coef = jax.nn.softmax(coef, axis=1)                       # softmax over spatial
    out = jnp.einsum("bnk,bnc->bkc", coef, xf.reshape(B, S * S, C))
    return out


if __name__ == "__main__":
    # small, module-consistent shapes
    B = 2                 # batch_size
    K = 8                 # num_classes
    C = 32                # image_feature_dim
    Wd = 16               # word_feature_dim
    D = 128               # intermediary_dim
    S = 8                 # convsize (spatial)

    key = jax.random.PRNGKey(0)
    k_img, k_word, k1, k2, k3, kb3, ka, kba = jax.random.split(key, 8)

    img_feature_map = jax.random.normal(k_img, (B, C, S, S), jnp.float32)
    word_features = jax.random.normal(k_word, (K, Wd), jnp.float32)

    params = {
        # weights stored pre-transposed (in_features, out_features)
        "w1": 0.05 * jax.random.normal(k1, (C, D), jnp.float32),
        "w2": 0.05 * jax.random.normal(k2, (Wd, D), jnp.float32),
        "w3": 0.05 * jax.random.normal(k3, (D, D), jnp.float32),
        "b3": 0.05 * jax.random.normal(kb3, (1, D), jnp.float32),
        "wa": 0.05 * jax.random.normal(ka, (1, D), jnp.float32),
        "ba": 0.05 * jax.random.normal(kba, (1, 1), jnp.float32),
    }

    # f32 gate path for the strict numerical check; pass gate_dtype=jnp.bfloat16
    # on v6e/v7x for higher VPU/EUP throughput on the tanh-gate.
    out = semantic_forward(img_feature_map, word_features, params)
    out = jax.block_until_ready(out)

    ref = semantic_reference(img_feature_map, word_features, params)
    assert out.shape == (B, K, C)
    assert jnp.allclose(out, ref, rtol=1e-4, atol=1e-4)

    print("KERNEL_OK")
</pallas_src>

<mosaic_0001>
module attributes {stable_mosaic.version = 11 : i64} {
  func.func @semantic_kernel(%arg0: i32, %arg1: memref<1x64x32xf32, #tpu.memory_space<vmem>>, %arg2: memref<8x16xf32, #tpu.memory_space<vmem>>, %arg3: memref<32x128xf32, #tpu.memory_space<vmem>>, %arg4: memref<16x128xf32, #tpu.memory_space<vmem>>, %arg5: memref<1x128xf32, #tpu.memory_space<vmem>>, %arg6: memref<1x8x32xf32, #tpu.memory_space<vmem>>) attributes {dimension_semantics = [#tpu.dimension_semantics<parallel>], iteration_bounds = array<i64: 2>, scalar_prefetch = 0 : i64, scratch_operands = 0 : i64, tpu.core_type = #tpu.core_type<tc>, window_params = [{transform_indices = @transform_0, window_bounds = array<i64: 1, 64, 32>}, {pipeline_mode = #tpu.pipeline_mode<synchronous>, transform_indices = @transform_1, window_bounds = array<i64: 8, 16>}, {pipeline_mode = #tpu.pipeline_mode<synchronous>, transform_indices = @transform_2, window_bounds = array<i64: 32, 128>}, {pipeline_mode = #tpu.pipeline_mode<synchronous>, transform_indices = @transform_3, window_bounds = array<i64: 16, 128>}, {pipeline_mode = #tpu.pipeline_mode<synchronous>, transform_indices = @transform_4, window_bounds = array<i64: 1, 128>}, {transform_indices = @transform_5, window_bounds = array<i64: 1, 8, 32>}]} {
    %c0 = arith.constant 0 : index
    %c0_0 = arith.constant 0 : index
    %c0_1 = arith.constant 0 : index
    %0 = vector.load %arg1[%c0, %c0_0, %c0_1] : memref<1x64x32xf32, #tpu.memory_space<vmem>>, vector<1x64x32xf32>
    %1 = vector.shape_cast %0 : vector<1x64x32xf32> to vector<64x32xf32>
    %c0_2 = arith.constant 0 : index
    %c0_3 = arith.constant 0 : index
    %2 = vector.load %arg3[%c0_2, %c0_3] : memref<32x128xf32, #tpu.memory_space<vmem>>, vector<32x128xf32>
    %cst = arith.constant dense<0.000000e+00> : vector<64x128xf32>
    %3 = tpu.matmul %1, %2, %cst {dimension_numbers = #tpu.dot_dimension_numbers<[1], [0], [0], [1], [0, 0, 1, 1], [], []>} : vector<64x32xf32>, vector<32x128xf32>, vector<64x128xf32> -> vector<64x128xf32>
    %c0_4 = arith.constant 0 : index
    %c0_5 = arith.constant 0 : index
    %4 = vector.load %arg2[%c0_4, %c0_5] : memref<8x16xf32, #tpu.memory_space<vmem>>, vector<8x16xf32>
    %c0_6 = arith.constant 0 : index
    %c0_7 = arith.constant 0 : index
    %5 = vector.load %arg4[%c0_6, %c0_7] : memref<16x128xf32, #tpu.memory_space<vmem>>, vector<16x128xf32>
    %cst_8 = arith.constant dense<0.000000e+00> : vector<8x128xf32>
    %6 = tpu.matmul %4, %5, %cst_8 {dimension_numbers = #tpu.dot_dimension_numbers<[1], [0], [0], [1], [0, 0, 1, 1], [], []>} : vector<8x16xf32>, vector<16x128xf32>, vector<8x128xf32> -> vector<8x128xf32>
    %c0_9 = arith.constant 0 : index
    %c0_10 = arith.constant 0 : index
    %7 = vector.load %arg5[%c0_9, %c0_10] : memref<1x128xf32, #tpu.memory_space<vmem>>, vector<1x128xf32>
    %8 = vector.shape_cast %7 : vector<1x128xf32> to vector<128xf32>
    %9 = vector.extract_strided_slice %3 {offsets = [0, 0], sizes = [32, 128], strides = [1, 1]} : vector<64x128xf32> to vector<32x128xf32>
    %10 = vector.shape_cast %6 : vector<8x128xf32> to vector<8x1x128xf32>
    %11 = vector.shape_cast %9 : vector<32x128xf32> to vector<1x32x128xf32>
    %12 = vector.broadcast %10 : vector<8x1x128xf32> to vector<8x32x128xf32>
    %13 = vector.broadcast %11 : vector<1x32x128xf32> to vector<8x32x128xf32>
    %14 = arith.mulf %12, %13 : vector<8x32x128xf32>
    %15 = math.tanh %14 : vector<8x32x128xf32>
    %16 = vector.shape_cast %8 : vector<128xf32> to vector<1x1x128xf32>
    %17 = vector.broadcast %16 : vector<1x1x128xf32> to vector<8x32x128xf32>
    %18 = arith.mulf %15, %17 : vector<8x32x128xf32>
    %cst_11 = arith.constant dense<0.000000e+00> : vector<8x32xf32>
    %19 = vector.multi_reduction <add>, %18, %cst_11 [2] : vector<8x32x128xf32> to vector<8x32xf32>
    %20 = vector.extract_strided_slice %3 {offsets = [32, 0], sizes = [32, 128], strides = [1, 1]} : vector<64x128xf32> to vector<32x128xf32>
    %21 = vector.shape_cast %6 : vector<8x128xf32> to vector<8x1x128xf32>
    %22 = vector.shape_cast %20 : vector<32x128xf32> to vector<1x32x128xf32>
    %23 = vector.broadcast %21 : vector<8x1x128xf32> to vector<8x32x128xf32>
    %24 = vector.broadcast %22 : vector<1x32x128xf32> to vector<8x32x128xf32>
    %25 = arith.mulf %23, %24 : vector<8x32x128xf32>
    %26 = math.tanh %25 : vector<8x32x128xf32>
    %27 = vector.shape_cast %8 : vector<128xf32> to vector<1x1x128xf32>
    %28 = vector.broadcast %27 : vector<1x1x128xf32> to vector<8x32x128xf32>
    %29 = arith.mulf %26, %28 : vector<8x32x128xf32>
    %cst_12 = arith.constant dense<0.000000e+00> : vector<8x32xf32>
    %30 = vector.multi_reduction <add>, %29, %cst_12 [2] : vector<8x32x128xf32> to vector<8x32xf32>
    %31 = tpu.concatenate %19, %30 in 1 : vector<8x32xf32>, vector<8x32xf32> -> vector<8x64xf32>
    %cst_13 = arith.constant dense<0xFF800000> : vector<8xf32>
    %32 = vector.multi_reduction <maximumf>, %31, %cst_13 [1] : vector<8x64xf32> to vector<8xf32>
    %33 = vector.shape_cast %32 : vector<8xf32> to vector<8x1xf32>
    %34 = vector.broadcast %33 : vector<8x1xf32> to vector<8x64xf32>
    %35 = arith.subf %31, %34 : vector<8x64xf32>
    %36 = math.exp %35 : vector<8x64xf32>
    %cst_14 = arith.constant dense<0.000000e+00> : vector<8xf32>
    %37 = vector.multi_reduction <add>, %36, %cst_14 [1] : vector<8x64xf32> to vector<8xf32>
    %38 = vector.shape_cast %37 : vector<8xf32> to vector<8x1xf32>
    %39 = vector.broadcast %38 : vector<8x1xf32> to vector<8x64xf32>
    %40 = arith.divf %36, %39 : vector<8x64xf32>
    %cst_15 = arith.constant dense<0.000000e+00> : vector<8x32xf32>
    %41 = tpu.matmul %40, %1, %cst_15 {dimension_numbers = #tpu.dot_dimension_numbers<[1], [0], [0], [1], [0, 0, 1, 1], [], []>} : vector<8x64xf32>, vector<64x32xf32>, vector<8x32xf32> -> vector<8x32xf32>
    %c0_16 = arith.constant 0 : index
    %c0_17 = arith.constant 0 : index
    %c0_18 = arith.constant 0 : index
    %42 = vector.load %arg6[%c0_16, %c0_17, %c0_18] : memref<1x8x32xf32, #tpu.memory_space<vmem>>, vector<1x8x32xf32>
    %43 = vector.shape_cast %42 : vector<1x8x32xf32> to vector<8x32xf32>
    %44 = vector.shape_cast %41 : vector<8x32xf32> to vector<1x8x32xf32>
    tpu.vector_store %arg6[%c0_16, %c0_17, %c0_18], %44 {strides = array<i32>} : memref<1x8x32xf32, #tpu.memory_space<vmem>>, vector<1x8x32xf32>,
    return
  }
  func.func @transform_0(%arg0: i32) -> (i32, i32, i32) {
    %c0_i32 = arith.constant 0 : i32
    %c0_i32_0 = arith.constant 0 : i32
    %c0_i32_1 = arith.constant 0 : i32
    return %arg0, %c0_i32, %c0_i32_0 : i32, i32, i32
  }
  func.func @transform_1(%arg0: i32) -> (i32, i32) {
    %c0_i32 = arith.constant 0 : i32
    %c0_i32_0 = arith.constant 0 : i32
    %c0_i32_1 = arith.constant 0 : i32
    return %c0_i32, %c0_i32_0 : i32, i32
  }
  func.func @transform_2(%arg0: i32) -> (i32, i32) {
    %c0_i32 = arith.constant 0 : i32
    %c0_i32_0 = arith.constant 0 : i32
    %c0_i32_1 = arith.constant 0 : i32
    return %c0_i32, %c0_i32_0 : i32, i32
  }
  func.func @transform_3(%arg0: i32) -> (i32, i32) {
    %c0_i32 = arith.constant 0 : i32
    %c0_i32_0 = arith.constant 0 : i32
    %c0_i32_1 = arith.constant 0 : i32
    return %c0_i32, %c0_i32_0 : i32, i32
  }
  func.func @transform_4(%arg0: i32) -> (i32, i32) {
    %c0_i32 = arith.constant 0 : i32
    %c0_i32_0 = arith.constant 0 : i32
    %c0_i32_1 = arith.constant 0 : i32
    return %c0_i32, %c0_i32_0 : i32, i32
  }
  func.func @transform_5(%arg0: i32) -> (i32, i32, i32) {
    %c0_i32 = arith.constant 0 : i32
    %c0_i32_0 = arith.constant 0 : i32
    %c0_i32_1 = arith.constant 0 : i32
    return %arg0, %c0_i32, %c0_i32_0 : i32, i32, i32
  }
}

</mosaic_0001>

<bundles_post_ra>
// kernel: tpu_custom_call.1
= control target key start
LH: loop header
LB: loop body
LE: loop exit
PB: predicated region body
PF: predicated region fallthrough
CT: control target
= control target key end

     0   :  { %10 = vsyncpa [#allocation3], 0  ;;  %s2565_s0 = inlined_call_operand.vmem [shape: f32[2,64,32], index: 0, kind: input, shape index: {}]   ;;  %s2566_s1 = inlined_call_operand.vmem [shape: f32[8,16], index: 1, kind: input, shape index: {}]   ;;  %s2567_s2 = inlined_call_operand.vmem [shape: f32[32,128], index: 2, kind: input, shape index: {}]   ;;  %s2568_s3 = inlined_call_operand.vmem [shape: f32[16,128], index: 3, kind: input, shape index: {}]   ;;  %s2569_s4 = inlined_call_operand.vmem [shape: f32[1,128], index: 4, kind: input, shape index: {}]   ;;  %s2570_s5 = inlined_call_operand.hbm [shape: f32[2,8,32], index: 5, kind: output, shape index: {}]  }
   0x1   :  { %12 = vsyncpa [#allocation3 + $0x1], 0  ;;  %s1815_s18 = smov 0   ;;  %s1817_s19 = smov 0  }
   0x2   :  { %s1819_s20 = smov 0   ;;  %s1821_s21 = smov 0  }
   0x3 LB: > { %s1836_s22 = sadd.s32 4294967295, %s1778_s21   ;;  %s1425_s23 = sadd.s32 4294967294, %s1778_s21   ;;  %s1778_s21 = sphi %s1821_s21, %s2576_s21   ;;  %s1774_s20 = sphi %s1819_s20, %s2575_s20   ;;  %s1770_s19 = sphi %s1817_s19, %s2574_s19   ;;  %s1766_s18 = sphi %s1815_s18, %s2573_s18  }
   0x4   : > { %s1840_s24 = sadd.s32 1, %s1778_s21   ;;  %s135_s25 = sadd.s32 1, %s1774_s20 }
   0x5   : > { %s132_s26 = ssub.s32 %s1778_s21, %s1840_s24  ;;  %p145_p0 = scmp.ne.s32.totalorder %s1774_s20, %s1770_s19 }
   0x6   : > { %p133_p1 = scmp.eq.s32.totalorder %s132_s26, 0  ;;  %p146_p2 = scmp.eq.s32.totalorder %s1836_s22, 1 }
   0x7   : > { %p151_p3 = scmp.ne.s32.totalorder %s1770_s19, %s1766_s18  ;;  %p152_p4 = scmp.eq.s32.totalorder %s1425_s23, 1 }
   0x8   : > { %s1851_s27 = scalar_select %p133_p1, %s1774_s20, %s135_s25  }
   0x9   : > { %p1853_p5 = por %p146_p2, %p145_p0  ;;  %p1857_p6 = por %p152_p4, %p151_p3 }
   0xa   : > { %p1428_p7 = scmp.ge.s32.totalorder %s1778_s21, 1  ;;  %p190_p8 = scmp.lt.s32.totalorder %s1778_s21, 3 }
   0xc   : > { %p191_p9 = pnand %p1428_p7, %p190_p8 }
   0xd   : > { %v231_v0 = vld [vmem:[%s2567_s2] sm:$0xff] (!%p191_p9)  ;;  %v232_v1 = vld [vmem:[%s2567_s2 + $0x8] sm:$0xff] (!%p191_p9)  ;;  %v1780_v3 = vmov (!%p191_p9), 0.0|0.0   ;;  %vm1781_vm0 = vmmov (!%p191_p9), 0   ;;  %v1782_v6 = vmov (!%p191_p9), 0.0   ;;  %v233_v7 = vld [vmem:[%s2567_s2 + $0x10] sm:$0xff] (!%p191_p9)  ;;  %v448_v26 = vlaneseq (!%p191_p9) }
   0xe   : > { %194 = sbr.rel (%p191_p9) target bundleno = 1068 (0x42c), region = 40  ;;  %v366_v2 = vld [vmem:[%s2568_s3] sm:$0xff] (!%p191_p9)  ;;  %1526 = vmatprep.subr.bf16.mxu1 (!%p191_p9), %v1780_v3  ;;  %v1518_v4 = vpack.c.bf16 (!%p191_p9), %v232_v1, %v231_v0  ;;  %v367_v5 = vld [vmem:[%s2568_s3 + $0x8] sm:$0xff] (!%p191_p9)  ;;  %1496 = vmatprep.mubr.msk.f32.mxu1 (!%p191_p9), %vm1781_vm0, %v1782_v6  ;;  %p218_p10 = scmp.lt.s32.totalorder (!%p191_p9), %s1836_s22, 1  ;;  %v234_v9 = vld [vmem:[%s2567_s2 + $0x18] sm:$0xff] (!%p191_p9)  ;;  %vm368_vm1 = vcmask (!%p191_p9), 130048  }
   0xf   : > { %v1527_v8 = vpack.c.bf16 (!%p191_p9), %v367_v5, %v366_v2  ;;  %v1522_v10 = vpack.c.bf16 (!%p191_p9), %v234_v9, %v233_v7  ;;  %v365_v11 = vld [vmem:[%s2566_s1] sm:$0xff] (!%p191_p9)  ;;  %vm235_vm2 = vcmask (!%p191_p9), 261120   ;;  %v1783_v24 = vmov (!%p191_p9), 1966171168   ;;  %s215_s10 = sand.u32 (!%p191_p9), 1, %s1770_s19   ;;  %s1444_s12 = sshll.u32 (!%p191_p9), %s1836_s22, 7 }
  0x10   : > { %1519 = vmatprep.subr.bf16.mxu0 (!%p191_p9), %v1518_v4  ;;  %v446_v25 = vunpack.c.l.s4 (!%p191_p9), %v1783_v24  ;;  %v1900_v28 = vshrl.u32 (!%p191_p9), %v448_v26, 7  ;;  %vm902_vm3 = vcmask (!%p191_p9), 130112   ;;  %vm909_vm4 = vcmask (!%p191_p9), 195712   ;;  %s1429_s11 = sshll.u32 (!%p191_p9), %s215_s10, 3  ;;  %s1353_s23 = scalar_lea.sflag (!%p191_p9), [#allocation3], %s215_s10 }
  0x11   : > { %1528 = vmatpush3.bf16.msra.mxu1 (!%p191_p9), %v1527_v8  ;;  %1521 = vmatpush3.bf16.msra.mxu0 (!%p191_p9), %v1518_v4  ;;  %vm916_vm5 = vcmask (!%p191_p9), 261312   ;;  %vm1051_vm6 = vcmask (!%p191_p9), 1041409   ;;  %vm1053_vm7 = vcmask (!%p191_p9), 1042434   ;;  %vm1055_vm8 = vcmask (!%p191_p9), 1043459   ;;  %s217_s13 = scalar_lea.vmem (!%p191_p9), [#allocation2], %s1429_s11 }
  0x12   : > { %1523 = vmatprep.subr.bf16.mxu0 (!%p191_p9), %v1522_v10  ;;  %1529 = vmatprep.subr.bf16.mxu1 (!%p191_p9), %v1780_v3  ;;  %v447_v27 = vunpack.c.0.s8 (!%p191_p9), %v446_v25  ;;  %v495_v34 = vsub.s32 (!%p191_p9), 0, %v1900_v28  ;;  %vm1057_vm9 = vcmask (!%p191_p9), 1044484   ;;  %vm1059_vm10 = vcmask (!%p191_p9), 1045509   ;;  %s1366_s14 = sshll.u32 (!%p191_p9), %s217_s13, 4  ;;  %s2524_s14 = int_to_ptr.vmem [resolvable:$true] %s1366_s14 }
  0x13   : > { %vm1061_vm11 = vcmask (!%p191_p9), 1046534   ;;  %vm1108_vm12 = vcmask (!%p191_p9), 392512   ;;  %vm1115_vm13 = vcmask (!%p191_p9), 458112   ;;  %vm1122_vm14 = vcmask (!%p191_p9), 523712   ;;  %s1716_s25 = scalar_lea.vmem (!%p191_p9), %s2524_s14, 128 }
  0x14   : > { %1497 = vmatmul.mubr.msk.f32.vlgmr.msra.gmra.mrb[0].mxu1 (!%p191_p9), %vm368_vm1, %v365_v11  ;;  %v450_v29 = vsub.s32 (!%p191_p9), %v447_v27, %v1900_v28  ;;  %vm1063_vm15 = vcmask (!%p191_p9), 1047559   ;;  %p1717_p11 = scmp.ne.s32.totalorder (!%p191_p9), %s2524_s14, %s1716_s25 }
  0x15   : > { %s219_s17 = scalar_select %p218_p10, %s1836_s22, 1  ;;  %1525 = vmatpush3.bf16.msra.mxu0 %v1522_v10  ;;  %1515 = vmatprep.mubr.msk.f32.mxu1 %vm1781_vm0, %v1782_v6  ;;  %vm1266_vm0 = vcmask 523264  }
  0x16   : > { %p1718_p12 = pnand %p1717_p11, %p1853_p5  ;;  %s1784_s22 = smov [#allocation2]  }
  0x17   : > { %s1447_s26 = sshll.u32 %s219_s17, 6  ;;  %s2522_s17 = scalar_lea.hbm %s2570_s5, %s1444_s12 }
  0x18   : > { %s222_s7 = scalar_lea.vmem %s2565_s0, %s1447_s26  ;;  %p1719_p13 = pneg %p1718_p12 }
  0x19   : > { %v223_v12 = vld [vmem:[%s222_s7] sm:$0xff]  ;;  %v224_v13 = vld [vmem:[%s222_s7 + $0x8] sm:$0xff]  ;;  %v225_v15 = vld [vmem:[%s222_s7 + $0x10] sm:$0xff]  ;;  %s1720_s26 = sshll.u32 %s1784_s22, 4  ;;  %s1721_s26 = int_to_ptr.vmem [resolvable:$false] %s1720_s26 }
  0x1a   : > { %1480 = vmatprep.mubr.msk.f32.mxu0 %vm235_vm2, %v223_v12  ;;  %v1530_v14 = vpack.c.bf16 %v224_v13, %v223_v12  ;;  %v226_v16 = vld [vmem:[%s222_s7 + $0x18] sm:$0xff]  ;;  %v227_v18 = vld [vmem:[%s222_s7 + $0x20] sm:$0xff]  ;;  %v228_v19 = vld [vmem:[%s222_s7 + $0x28] sm:$0xff]  ;;  %s1722_s30 = scalar_lea.vmem %s1721_s26, 256  ;;  %p1723_p0 = scmp.lt.s32.totalorder %s2524_s14, %s1721_s26 }
  0x1b   : > { %v1533_v17 = vpack.c.bf16 %v226_v16, %v225_v15  ;;  %1481 = vmatmul.mubr.msk.f32.vlgmr.msra.gmra.mrb[0].mxu0 %vm235_vm2, %v224_v13  ;;  %v1536_v20 = vpack.c.bf16 %v228_v19, %v227_v18  ;;  %v229_v21 = vld [vmem:[%s222_s7 + $0x30] sm:$0xff]  ;;  %v230_v22 = vld [vmem:[%s222_s7 + $0x38] sm:$0xff]  ;;  %p1724_p1 = scmp.lt.s32.totalorder %s1722_s30, %s1716_s25 }
  0x1c   : > { %1531 = vmatpush3.bf16.msra.mxu1 %v1530_v14  ;;  %1483 = vmatprep.mubr.msk.f32.mxu0 %vm235_vm2, %v225_v15  ;;  %v1539_v23 = vpack.c.bf16 %v230_v22, %v229_v21 }
  0x1d   : > { %1532 = vmatprep.subr.bf16.mxu1 %v1780_v3  ;;  %p1725_p2 = por %p1724_p1, %p1723_p0 }
  0x1f   : > { %1484 = vmatmul.mubr.msk.f32.gmra.mrb[2].mxu0 %vm235_vm2, %v226_v16  ;;  %p1726_p3 = pnand %p1725_p2, %p1719_p13 }
  0x20   : > { %1534 = vmatpush3.bf16.msra.mxu1 %v1533_v17  ;;  %1486 = vmatprep.mubr.msk.f32.mxu0 %vm235_vm2, %v227_v18 }
  0x21   : > { %1535 = vmatprep.subr.bf16.mxu1 %v1780_v3 }
  0x23   : > { %1487 = vmatmul.mubr.msk.f32.gmra.mrb[4].mxu0 %vm235_vm2, %v228_v19 }
  0x24   : > { %1537 = vmatpush3.bf16.msra.mxu1 %v1536_v20  ;;  %1489 = vmatprep.mubr.msk.f32.mxu0 %vm235_vm2, %v229_v21 }
  0x25   : > { %1538 = vmatprep.subr.bf16.mxu1 %v1780_v3 }
  0x27   : > { %1490 = vmatmul.mubr.msk.f32.gmra.mrb[6].mxu0 %vm235_vm2, %v230_v22 }
  0x28   : > { %1540 = vmatpush3.bf16.msra.mxu1 %v1539_v23  ;;  %v1975_v23 = vld [vmem:[%s2569_s4] ss:$0 sm:$0xff] }
  0xe7   : > { %v438_v30 = vpop.f32.mrb[0].mxu1 }
  0xe8   : > { %v444_v31 = vcombine.high %v438_v30, %v438_v30  ;;  %v451_v32 = vrot.slane %v438_v30, %v450_v29  ;;  %v1498_v33 = vpop.f32.mrb[1].mxu1 }
  0xea   : > { %v458_v35 = vrot.slane %v444_v31, %v450_v29  ;;  %v459_v36 = vcombine.high %v451_v32, %v451_v32  ;;  %v467_v37 = vrot.slane %v451_v32, %v450_v29 }
  0xec   : > { %v460_v39 = vcombine.high %v458_v35, %v458_v35  ;;  %v474_v40 = vrot.slane %v458_v35, %v450_v29  ;;  %v481_v41 = vrot.slane %v459_v36, %v450_v29  ;;  %v489_v42 = vcombine.high %v467_v37, %v467_v37 }
  0xed   : > { %v1904_v44 = vrot.slane %v467_v37, %v495_v34 }
  0xee   : > { %v1482_v38 = vpop.f32.mrb[0].mxu0  ;;  %v488_v45 = vrot.slane %v460_v39, %v450_v29  ;;  %v490_v46 = vcombine.high %v474_v40, %v474_v40  ;;  %v491_v47 = vcombine.high %v481_v41, %v481_v41  ;;  %v1906_v48 = vrot.slane %v481_v41, %v495_v34 }
  0xef   : > { %v326_v43 = vpop.f32.mrb[1].mxu0  ;;  %v1908_v49 = vrot.slane %v489_v42, %v495_v34  ;;  %v1910_v50 = vrot.slane %v474_v40, %v495_v34  ;;  %v534_v53 = vmul.f32 %v1482_v38, %v1904_v44 }
  0xf0   : > { %v533_v52 = vmul.f32 %v1904_v44, %v326_v43  ;;  %v492_v54 = vcombine.high %v488_v45, %v488_v45  ;;  %v1916_v55 = vrot.slane %v491_v47, %v495_v34  ;;  %v1918_v56 = vrot.slane %v488_v45, %v495_v34 }
  0xf1   : > { %v1920_v57 = vrot.slane %v490_v46, %v495_v34  ;;  %v537_v59 = vmul.f32 %v1906_v48, %v326_v43  ;;  %v538_v60 = vmul.f32 %v1482_v38, %v1906_v48  ;;  %v541_v61 = vmul.f32 %v1908_v49, %v326_v43 }
  0xf2   : > { %v1912_v51 = vpop.f32.mrb[2].mxu0  ;;  %1584 = vtanh.f32 %v533_v52  ;;  %v1925_v62 = vrot.slane %v492_v54, %v495_v34  ;;  %v542_v63 = vmul.f32 %v1482_v38, %v1908_v49  ;;  %v549_v0 = vmul.f32 %v1910_v50, %v326_v43 }
  0xf3   : > { %v336_v58 = vpop.f32.mrb[3].mxu0  ;;  %1586 = vtanh.f32 %v534_v53  ;;  %v550_v2 = vmul.f32 %v1482_v38, %v1910_v50  ;;  %v536_v3 = vmul.f32 %v1912_v51, %v1904_v44  ;;  %v540_v4 = vmul.f32 %v1912_v51, %v1906_v48 }
  0xf4   : > { %1588 = vtanh.f32 %v537_v59  ;;  %v544_v6 = vmul.f32 %v1912_v51, %v1908_v49  ;;  %v539_v7 = vmul.f32 %v1906_v48, %v336_v58  ;;  %v552_v8 = vmul.f32 %v1912_v51, %v1910_v50 }
  0xf5   : > { %1590 = vtanh.f32 %v538_v60  ;;  %v545_v9 = vmul.f32 %v1916_v55, %v326_v43  ;;  %v535_v10 = vmul.f32 %v1904_v44, %v336_v58  ;;  %v547_v11 = vmul.f32 %v1916_v55, %v336_v58 }
  0xf6   : > { %v1929_v1 = vpop.f32.mrb[4].mxu0  ;;  %1592 = vtanh.f32 %v541_v61  ;;  %v543_v12 = vmul.f32 %v1908_v49, %v336_v58  ;;  %v551_v13 = vmul.f32 %v1910_v50, %v336_v58  ;;  %v546_v14 = vmul.f32 %v1482_v38, %v1916_v55 }
  0xf7   : > { %v1936_v5 = vpop.f32.mrb[5].mxu0  ;;  %1594 = vtanh.f32 %v542_v63  ;;  %v1952_v16 = vmul.f32 %v1482_v38, %v1918_v56  ;;  %v1956_v17 = vmul.f32 %v1912_v51, %v1916_v55  ;;  %v1959_v18 = vmul.f32 %v1918_v56, %v336_v58 }
  0xf8   : > { %1596 = vtanh.f32 %v549_v0  ;;  %v1964_v20 = vmul.f32 %v1918_v56, %v326_v43  ;;  %v1967_v21 = vmul.f32 %v1482_v38, %v1920_v57  ;;  %v1970_v22 = vmul.f32 %v1920_v57, %v326_v43 }
  0xf9   : > { %1598 = vtanh.f32 %v550_v2  ;;  %v1978_v24 = vmul.f32 %v1920_v57, %v336_v58  ;;  %v1982_v25 = vmul.f32 %v1912_v51, %v1918_v56  ;;  %v1985_v27 = vmul.f32 %v1482_v38, %v1925_v62 }
  0xfa   : > { %v1949_v15 = vpop.f32.mrb[6].mxu0  ;;  %1600 = vtanh.f32 %v536_v3  ;;  %v1989_v29 = vmul.f32 %v1912_v51, %v1920_v57  ;;  %v1992_v30 = vmul.f32 %v1925_v62, %v336_v58  ;;  %v1995_v31 = vmul.f32 %v1925_v62, %v326_v43 }
  0xfb   : > { %v1961_v19 = vpop.f32.mrb[7].mxu0  ;;  %1602 = vtanh.f32 %v540_v4  ;;  %v1999_v33 = vmul.f32 %v1929_v1, %v1904_v44  ;;  %v2003_v34 = vmul.f32 %v1904_v44, %v1936_v5  ;;  %v2007_v35 = vmul.f32 %v1929_v1, %v1906_v48 }
  0xfc   : > { %v1585_v32 = vpop.eup %1584  ;;  %1604 = vtanh.f32 %v544_v6  ;;  %v2012_v38 = vmul.f32 %v1906_v48, %v1936_v5  ;;  %v2016_v39 = vmul.f32 %v1929_v1, %v1908_v49  ;;  %v2020_v41 = vmul.f32 %v1908_v49, %v1936_v5 }
  0xfd   : > { %v1587_v36 = vpop.eup %1586  ;;  %v603_v37 = vmul.f32 %v1585_v32, %v1975_v23  ;;  %1606 = vtanh.f32 %v539_v7  ;;  %v2024_v42 = vmul.f32 %v1929_v1, %v1916_v55  ;;  %v2029_v46 = vmul.f32 %v1916_v55, %v1936_v5 }
  0xfe   : > { %v1589_v40 = vpop.eup %1588  ;;  %1608 = vtanh.f32 %v552_v8  ;;  %v2033_v47 = vmul.f32 %v1929_v1, %v1910_v50  ;;  %v2037_v53 = vmul.f32 %v1910_v50, %v1936_v5  ;;  %v2041_v54 = vmul.f32 %v1929_v1, %v1918_v56 }
  0xff   : > { %v1591_v43 = vpop.eup %1590  ;;  %635 = vadd.xlane.f32.xlu0 %v603_v37  ;;  %v607_v45 = vmul.f32 %v1589_v40, %v1975_v23  ;;  %1610 = vtanh.f32 %v545_v9  ;;  %v604_v59 = vmul.f32 %v1587_v36, %v1975_v23  ;;  %v2046_v60 = vmul.f32 %v1918_v56, %v1936_v5 }
 0x100   : > { %v1593_v52 = vpop.eup %1592  ;;  %1612 = vtanh.f32 %v535_v10  ;;  %v2050_v61 = vmul.f32 %v1929_v1, %v1920_v57  ;;  %v2054_v0 = vmul.f32 %v1920_v57, %v1936_v5  ;;  %v2058_v2 = vmul.f32 %v1929_v1, %v1925_v62 }
 0x101   : > { %v1595_v58 = vpop.eup %1594  ;;  %643 = vadd.xlane.f32.xlu1 %v607_v45  ;;  %1614 = vtanh.f32 %v547_v11  ;;  %v608_v4 = vmul.f32 %v1591_v43, %v1975_v23  ;;  %v2063_v6 = vmul.f32 %v1925_v62, %v1936_v5  ;;  %v2067_v7 = vmul.f32 %v1949_v15, %v1904_v44 }
 0x102   : > { %v1597_v63 = vpop.eup %1596  ;;  %1616 = vtanh.f32 %v543_v12  ;;  %v2071_v9 = vmul.f32 %v1949_v15, %v1906_v48  ;;  %v2075_v1 = vmul.f32 %v1906_v48, %v1961_v19  ;;  %v611_v11 = vmul.f32 %v1593_v52, %v1975_v23 }
 0x103   : > { %v1599_v3 = vpop.eup %1598  ;;  %637 = vadd.xlane.f32.xlu0 %v604_v59  ;;  %1618 = vtanh.f32 %v551_v13  ;;  %v2081_v5 = vmul.f32 %v1949_v15, %v1908_v49  ;;  %v2085_v12 = vmul.f32 %v1908_v49, %v1961_v19  ;;  %v2090_v48 = vmul.f32 %v1949_v15, %v1916_v55 }
 0x104   : > { %v1601_v8 = vpop.eup %1600  ;;  %1620 = vtanh.f32 %v546_v14  ;;  %v2094_v14 = vmul.f32 %v1916_v55, %v1961_v19  ;;  %v612_v32 = vmul.f32 %v1595_v58, %v1975_v23  ;;  %v2100_v49 = vmul.f32 %v1949_v15, %v1910_v50 }
 0x105   : > { %v1603_v10 = vpop.eup %1602  ;;  %645 = vadd.xlane.f32.xlu1 %v608_v4  ;;  %1622 = vtanh.f32 %v1952_v16  ;;  %v2109_v55 = vmul.f32 %v1949_v15, %v1918_v56  ;;  %v2113_v37 = vmul.f32 %v1918_v56, %v1961_v19  ;;  %v619_v40 = vmul.f32 %v1597_v63, %v1975_v23 }
 0x106   : > { %v1605_v13 = vpop.eup %1604  ;;  %1624 = vtanh.f32 %v1956_v17  ;;  %v2104_v17 = vmul.f32 %v1910_v50, %v1961_v19  ;;  %v2119_v50 = vmul.f32 %v1904_v44, %v1961_v19  ;;  %v2128_v56 = vmul.f32 %v1949_v15, %v1920_v57 }
 0x107   : > { %v1607_v16 = vpop.eup %1606  ;;  %651 = vadd.xlane.f32.xlu0 %v611_v11  ;;  %1626 = vtanh.f32 %v1959_v18  ;;  %v2132_v45 = vmul.f32 %v1925_v62, %v1961_v19  ;;  %v620_v44 = vmul.f32 %v1599_v3, %v1975_v23  ;;  %v2138_v52 = vmul.f32 %v1912_v51, %v1925_v62 }
 0x108   : > { %v1609_v36 = vpop.eup %1608  ;;  %1628 = vtanh.f32 %v1964_v20  ;;  %v2123_v20 = vmul.f32 %v1920_v57, %v1961_v19  ;;  %v606_v19 = vmul.f32 %v1601_v8, %v1975_v23  ;;  %v610_v51 = vmul.f32 %v1603_v10, %v1975_v23 }
 0x109   : > { %v1611_v18 = vpop.eup %1610  ;;  %653 = vadd.xlane.f32.xlu1 %v612_v32  ;;  %1630 = vtanh.f32 %v1967_v21 }
 0x10a   : > { %v1613_v43 = vpop.eup %1612  ;;  %1632 = vtanh.f32 %v1970_v22  ;;  %v2142_v22 = vmul.f32 %v1949_v15, %v1925_v62 }
 0x10b   : > { %v1615_v21 = vpop.eup %1614  ;;  %667 = vadd.xlane.f32.xlu0 %v619_v40  ;;  %1634 = vtanh.f32 %v1978_v24 }
 0x10c   : > { %v1617_v57 = vpop.eup %1616  ;;  %1636 = vtanh.f32 %v1982_v25  ;;  %v614_v25 = vmul.f32 %v1605_v13, %v1975_v23 }
 0x10d   : > { %v1619_v58 = vpop.eup %1618  ;;  %669 = vadd.xlane.f32.xlu1 %v620_v44  ;;  %1638 = vtanh.f32 %v1985_v27  ;;  %v613_v11 = vmul.f32 %v1617_v57, %v1975_v23 }
 0x10e   : > { %v1621_v59 = vpop.eup %1620  ;;  %1640 = vtanh.f32 %v1989_v29 }
 0x10f   : > { %v2148_v24 = vpop.eup %1622  ;;  %641 = vadd.xlane.f32.xlu0 %v606_v19  ;;  %1642 = vtanh.f32 %v1992_v30  ;;  %v609_v30 = vmul.f32 %v1607_v16, %v1975_v23 }
 0x110   : > { %v2152_v62 = vpop.eup %1624  ;;  %1644 = vtanh.f32 %v1995_v31 }
 0x111   : > { %v2155_v15 = vpop.eup %1626  ;;  %649 = vadd.xlane.f32.xlu1 %v610_v51  ;;  %1646 = vtanh.f32 %v1999_v33  ;;  %v622_v33 = vmul.f32 %v1609_v36, %v1975_v23 }
 0x112   : > { %v2159_v27 = vpop.eup %1628  ;;  %1648 = vtanh.f32 %v2003_v34 }
 0x113   : > { %v2162_v29 = vpop.eup %1630  ;;  %657 = vadd.xlane.f32.xlu0 %v614_v25  ;;  %1650 = vtanh.f32 %v2007_v35  ;;  %v615_v35 = vmul.f32 %v1611_v18, %v1975_v23  ;;  %v616_v18 = vmul.f32 %v1621_v59, %v1975_v23 }
 0x114   : > { %v2166_v63 = vpop.eup %1632  ;;  %1652 = vtanh.f32 %v2012_v38 }
 0x115   : > { %v2169_v31 = vpop.eup %1634  ;;  %647 = vadd.xlane.f32.xlu1 %v609_v30  ;;  %1654 = vtanh.f32 %v2016_v39  ;;  %v605_v39 = vmul.f32 %v1613_v43, %v1975_v23 }
 0x116   : > { %v2173_v3 = vpop.eup %1636  ;;  %1656 = vtanh.f32 %v2020_v41 }
 0x117   : > { %v2176_v34 = vpop.eup %1638  ;;  %673 = vadd.xlane.f32.xlu0 %v622_v33  ;;  %1658 = vtanh.f32 %v2024_v42  ;;  %v617_v42 = vmul.f32 %v1615_v21, %v1975_v23 }
 0x118   : > { %v2180_v4 = vpop.eup %1640  ;;  %1660 = vtanh.f32 %v2029_v46 }
 0x119   : > { %v2183_v38 = vpop.eup %1642  ;;  %659 = vadd.xlane.f32.xlu1 %v615_v35  ;;  %1662 = vtanh.f32 %v2033_v47 }
 0x11a   : > { %v2187_v8 = vpop.eup %1644  ;;  %1664 = vtanh.f32 %v2037_v53 }
 0x11b   : > { %v2190_v41 = vpop.eup %1646  ;;  %639 = vadd.xlane.f32.xlu0 %v605_v39  ;;  %1666 = vtanh.f32 %v2041_v54  ;;  %v621_v54 = vmul.f32 %v1619_v58, %v1975_v23 }
 0x11c   : > { %v1649_v10 = vpop.eup %1648  ;;  %1668 = vtanh.f32 %v2046_v60 }
 0x11d   : > { %v1651_v46 = vpop.eup %1650  ;;  %663 = vadd.xlane.f32.xlu1 %v617_v42  ;;  %v2197_v47 = vmul.f32 %v1649_v10, %v1975_v23  ;;  %1670 = vtanh.f32 %v2050_v61 }
 0x11e   : > { %v1653_v53 = vpop.eup %1652  ;;  %v2201_v13 = vmul.f32 %v1651_v46, %v1975_v23  ;;  %1672 = vtanh.f32 %v2054_v0 }
 0x11f   : > { %v1655_v16 = vpop.eup %1654  ;;  %655 = vadd.xlane.f32.xlu0 %v613_v11  ;;  %v2206_v60 = vmul.f32 %v1653_v53, %v1975_v23  ;;  %1674 = vtanh.f32 %v2058_v2  ;;  %v626_v11 = vmul.f32 %v2173_v3, %v1975_v23  ;;  %v630_v3 = vmul.f32 %v2180_v4, %v1975_v23 }
 0x120   : > { %v1657_v32 = vpop.eup %1656  ;;  %v2210_v36 = vmul.f32 %v1655_v16, %v1975_v23  ;;  %1676 = vtanh.f32 %v2063_v6  ;;  %v624_v6 = vmul.f32 %v2148_v24, %v1975_v23  ;;  %v631_v4 = vmul.f32 %v2187_v8, %v1975_v23 }
 0x121   : > { %v1659_v61 = vpop.eup %1658  ;;  %671 = vadd.xlane.f32.xlu1 %v621_v54  ;;  %v2215_v0 = vmul.f32 %v1657_v32, %v1975_v23  ;;  %1678 = vtanh.f32 %v2067_v7 }
 0x122   : > { %v1661_v40 = vpop.eup %1660  ;;  %v2219_v43 = vmul.f32 %v1659_v61, %v1975_v23  ;;  %1680 = vtanh.f32 %v2071_v9  ;;  %v618_v9 = vmul.f32 %v2152_v62, %v1975_v23 }
 0x123   : > { %v1663_v2 = vpop.eup %1662  ;;  %661 = vadd.xlane.f32.xlu0 %v616_v18  ;;  %v2225_v21 = vmul.f32 %v1661_v40, %v1975_v23  ;;  %1682 = vtanh.f32 %v2075_v1 }
 0x124   : > { %v1665_v44 = vpop.eup %1664  ;;  %v2229_v57 = vmul.f32 %v1663_v2, %v1975_v23  ;;  %1684 = vtanh.f32 %v2081_v5  ;;  %v625_v5 = vmul.f32 %v2155_v15, %v1975_v23 }
 0x125   : > { %v1667_v7 = vpop.eup %1666  ;;  %677 = vadd.xlane.f32.xlu1 %v624_v6  ;;  %v2235_v58 = vmul.f32 %v1665_v44, %v1975_v23  ;;  %1686 = vtanh.f32 %v2085_v12 }
 0x126   : > { %v1669_v19 = vpop.eup %1668  ;;  %v2239_v59 = vmul.f32 %v1667_v7, %v1975_v23  ;;  %1688 = vtanh.f32 %v2090_v48  ;;  %v623_v48 = vmul.f32 %v2159_v27, %v1975_v23 }
 0x127   : > { %v1671_v1 = vpop.eup %1670  ;;  %665 = vadd.xlane.f32.xlu0 %v618_v9  ;;  %v2245_v24 = vmul.f32 %v1669_v19, %v1975_v23  ;;  %1690 = vtanh.f32 %v2094_v14 }
 0x128   : > { %v1673_v51 = vpop.eup %1672  ;;  %v2249_v62 = vmul.f32 %v1671_v1, %v1975_v23  ;;  %1692 = vtanh.f32 %v2100_v49  ;;  %v628_v49 = vmul.f32 %v2162_v29, %v1975_v23 }
 0x129   : > { %v1675_v12 = vpop.eup %1674  ;;  %679 = vadd.xlane.f32.xlu1 %v625_v5  ;;  %v2255_v25 = vmul.f32 %v1673_v51, %v1975_v23  ;;  %1694 = vtanh.f32 %v2104_v17 }
 0x12a   : > { %v1677_v15 = vpop.eup %1676  ;;  %v2259_v30 = vmul.f32 %v1675_v12, %v1975_v23  ;;  %1696 = vtanh.f32 %v2109_v55  ;;  %v627_v55 = vmul.f32 %v2166_v63, %v1975_v23 }
 0x12b   : > { %v1679_v14 = vpop.eup %1678  ;;  %675 = vadd.xlane.f32.xlu0 %v623_v48  ;;  %v2265_v33 = vmul.f32 %v1677_v15, %v1975_v23  ;;  %1698 = vtanh.f32 %v2113_v37 }
 0x12c   : > { %v1681_v27 = vpop.eup %1680  ;;  %v2269_v35 = vmul.f32 %v1679_v14, %v1975_v23  ;;  %1700 = vtanh.f32 %v2119_v50  ;;  %v629_v50 = vmul.f32 %v2169_v31, %v1975_v23 }
 0x12d   : > { %v1683_v17 = vpop.eup %1682  ;;  %685 = vadd.xlane.f32.xlu1 %v628_v49  ;;  %v2275_v39 = vmul.f32 %v1681_v27, %v1975_v23  ;;  %1702 = vtanh.f32 %v2123_v20 }
 0x12e   : > { %v1685_v29 = vpop.eup %1684  ;;  %v2279_v42 = vmul.f32 %v1683_v17, %v1975_v23  ;;  %1704 = vtanh.f32 %v2128_v56 }
 0x12f   : > { %v1687_v37 = vpop.eup %1686  ;;  %683 = vadd.xlane.f32.xlu0 %v627_v55  ;;  %v774_v10 = vmul.f32 %v1685_v29, %v1975_v23  ;;  %1706 = vtanh.f32 %v2132_v45  ;;  %v632_v45 = vmul.f32 %v2176_v34, %v1975_v23  ;;  %v633_v34 = vmul.f32 %v2183_v38, %v1975_v23 }
 0x130   : > { %v1689_v63 = vpop.eup %1688  ;;  %v773_v46 = vmul.f32 %v1687_v37, %v1975_v23  ;;  %1708 = vtanh.f32 %v2138_v52  ;;  %v764_v38 = vmul.f32 %v2190_v41, %v1975_v23 }
 0x131   : > { %v1691_v20 = vpop.eup %1690  ;;  %687 = vadd.xlane.f32.xlu1 %v629_v50  ;;  %v778_v56 = vmul.f32 %v1689_v63, %v1975_v23  ;;  %1710 = vtanh.f32 %v2142_v22 }
 0x132   : > { %v1693_v53 = vpop.eup %1692  ;;  %v777_v31 = vmul.f32 %v1691_v20, %v1975_v23 }
 0x133   : > { %v1695_v16 = vpop.eup %1694  ;;  %681 = vadd.xlane.f32.xlu0 %v626_v11  ;;  %v782_v54 = vmul.f32 %v1693_v53, %v1975_v23 }
 0x134   : > { %v1697_v52 = vpop.eup %1696  ;;  %v781_v32 = vmul.f32 %v1695_v16, %v1975_v23 }
 0x135   : > { %v1699_v61 = vpop.eup %1698  ;;  %693 = vadd.xlane.f32.xlu1 %v632_v45  ;;  %v786_v22 = vmul.f32 %v1697_v52, %v1975_v23 }
 0x136   : > { %v1701_v18 = vpop.eup %1700  ;;  %v785_v40 = vmul.f32 %v1699_v61, %v1975_v23 }
 0x137   : > { %v1703_v2 = vpop.eup %1702  ;;  %689 = vadd.xlane.f32.xlu0 %v630_v3  ;;  %v765_v6 = vmul.f32 %v1701_v18, %v1975_v23 }
 0x138   : > { %v1705_v44 = vpop.eup %1704  ;;  %v789_v7 = vmul.f32 %v1703_v2, %v1975_v23 }
 0x139   : > { %v1707_v9 = vpop.eup %1706  ;;  %695 = vadd.xlane.f32.xlu1 %v633_v34  ;;  %v790_v19 = vmul.f32 %v1705_v44, %v1975_v23 }
 0x13a   : > { %v1709_v1 = vpop.eup %1708  ;;  %v793_v5 = vmul.f32 %v1707_v9, %v1975_v23 }
 0x13b   : > { %v1711_v51 = vpop.eup %1710  ;;  %691 = vadd.xlane.f32.xlu0 %v631_v4  ;;  %v634_v12 = vmul.f32 %v1709_v1, %v1975_v23 }
 0x13c   : > { %v794_v48 = vmul.f32 %v1711_v51, %v1975_v23  ;;  %v2332_v23 = vand.u32 127, %v448_v26 }
 0x13d   : > { %797 = vadd.xlane.f32.xlu1 %v764_v38 }
 0x13e   : > { %v897_v8 = vadd.s32 4294967288, %v2332_v23 }
 0x13f   : > { %795 = vadd.xlane.f32.xlu0 %v2197_v47  ;;  %v2337_v47 = vsub.s32 %v2332_v23, %v1900_v28 }
 0x141   : > { %805 = vadd.xlane.f32.xlu1 %v2201_v13  ;;  %v2340_v13 = vsub.s32 %v897_v8, %v1900_v28 }
 0x143   : > { %803 = vadd.xlane.f32.xlu0 %v2206_v60 }
 0x145   : > { %813 = vadd.xlane.f32.xlu1 %v2210_v36 }
 0x147   : > { %811 = vadd.xlane.f32.xlu0 %v2215_v0 }
 0x149   : > { %821 = vadd.xlane.f32.xlu1 %v2219_v43 }
 0x14b   : > { %819 = vadd.xlane.f32.xlu0 %v2225_v21 }
 0x14d   : > { %829 = vadd.xlane.f32.xlu1 %v2229_v57 }
 0x14f   : > { %827 = vadd.xlane.f32.xlu0 %v2235_v58 }
 0x151   : > { %837 = vadd.xlane.f32.xlu1 %v2239_v59 }
 0x153   : > { %835 = vadd.xlane.f32.xlu0 %v2245_v24 }
 0x155   : > { %845 = vadd.xlane.f32.xlu1 %v2249_v62 }
 0x157   : > { %843 = vadd.xlane.f32.xlu0 %v2255_v25 }
 0x159   : > { %853 = vadd.xlane.f32.xlu1 %v2259_v30 }
 0x15b   : > { %851 = vadd.xlane.f32.xlu0 %v2265_v33 }
 0x15d   : > { %801 = vadd.xlane.f32.xlu1 %v2269_v35  ;;  %v904_v35 = vadd.s32 4294967280, %v2332_v23 }
 0x15f   : > { %809 = vadd.xlane.f32.xlu0 %v2275_v39  ;;  %v911_v39 = vadd.s32 4294967272, %v2332_v23 }
 0x161   : > { %807 = vadd.xlane.f32.xlu1 %v2279_v42  ;;  %v2357_v42 = vsub.s32 %v904_v35, %v1900_v28  ;;  %v2360_v50 = vsub.s32 %v911_v39, %v1900_v28 }
 0x163   : > { %817 = vadd.xlane.f32.xlu0 %v774_v10 }
 0x165   : > { %815 = vadd.xlane.f32.xlu1 %v773_v46 }
 0x167   : > { %825 = vadd.xlane.f32.xlu0 %v778_v56 }
 0x169   : > { %823 = vadd.xlane.f32.xlu1 %v777_v31 }
 0x16b   : > { %833 = vadd.xlane.f32.xlu0 %v782_v54 }
 0x16d   : > { %831 = vadd.xlane.f32.xlu1 %v781_v32 }
 0x16f   : > { %841 = vadd.xlane.f32.xlu0 %v786_v22 }
 0x171   : > { %839 = vadd.xlane.f32.xlu1 %v785_v40 }
 0x173   : > { %799 = vadd.xlane.f32.xlu0 %v765_v6 }
 0x175   : > { %847 = vadd.xlane.f32.xlu1 %v789_v7 }
 0x177   : > { %849 = vadd.xlane.f32.xlu0 %v790_v19 }
 0x179   : > { %855 = vadd.xlane.f32.xlu1 %v793_v5 }
 0x17b   : > { %697 = vadd.xlane.f32.xlu0 %v634_v12 }
 0x17d   : > { %857 = vadd.xlane.f32.xlu1 %v794_v48 }
 0x18c   : > { %v636_v41 = vpop.xlane.xlu0 %635 }
 0x18d   : > { %v896_v0 = vrot.slane %v636_v41, %v2337_v47 }
 0x18e   : > { %v644_v60 = vpop.xlane.xlu1 %643 }
 0x18f   : > { %v921_v26 = vrot.slane %v644_v60, %v2337_v47 }
 0x190   : > { %v638_v36 = vpop.xlane.xlu0 %637 }
 0x191   : > { %v901_v43 = vrot.slane %v638_v36, %v2340_v13 }
 0x192   : > { %v646_v21 = vpop.xlane.xlu1 %645 }
 0x193   : > { %v903_v57 = vsel %vm902_vm3, %v901_v43, %v896_v0  ;;  %v925_v58 = vrot.slane %v646_v21, %v2340_v13 }
 0x194   : > { %v652_v59 = vpop.xlane.xlu0 %651 }
 0x195   : > { %v926_v24 = vsel %vm902_vm3, %v925_v58, %v921_v26  ;;  %v940_v25 = vrot.slane %v652_v59, %v2337_v47 }
 0x196   : > { %v654_v62 = vpop.xlane.xlu1 %653 }
 0x197   : > { %v944_v15 = vrot.slane %v654_v62, %v2340_v13 }
 0x198   : > { %v668_v30 = vpop.xlane.xlu0 %667 }
 0x199   : > { %v945_v14 = vsel %vm902_vm3, %v944_v15, %v940_v25  ;;  %v978_v33 = vrot.slane %v668_v30, %v2337_v47 }
 0x19a   : > { %v670_v49 = vpop.xlane.xlu1 %669 }
 0x19b   : > { %v982_v27 = vrot.slane %v670_v49, %v2340_v13 }
 0x19c   : > { %v642_v17 = vpop.xlane.xlu0 %641 }
 0x19d   : > { %v983_v55 = vsel %vm902_vm3, %v982_v27, %v978_v33  ;;  %v915_v45 = vrot.slane %v642_v17, %v2360_v50 }
 0x19e   : > { %v650_v29 = vpop.xlane.xlu1 %649 }
 0x19f   : > { %v935_v46 = vrot.slane %v650_v29, %v2360_v50 }
 0x1a0   : > { %v658_v37 = vpop.xlane.xlu0 %657 }
 0x1a1   : > { %v954_v18 = vrot.slane %v658_v37, %v2360_v50 }
 0x1a2   : > { %v648_v10 = vpop.xlane.xlu1 %647 }
 0x1a3   : > { %v930_v63 = vrot.slane %v648_v10, %v2357_v42 }
 0x1a4   : > { %v674_v20 = vpop.xlane.xlu0 %673 }
 0x1a5   : > { %v931_v11 = vsel %vm909_vm4, %v930_v63, %v926_v24  ;;  %v992_v6 = vrot.slane %v674_v20, %v2360_v50 }
 0x1a6   : > { %v936_v56 = vsel %vm916_vm5, %v935_v46, %v931_v11  ;;  %v660_v53 = vpop.xlane.xlu1 %659 }
 0x1a7   : > { %v959_v9 = vrot.slane %v660_v53, %v2337_v47 }
 0x1a8   : > { %v640_v31 = vpop.xlane.xlu0 %639 }
 0x1a9   : > { %v908_v16 = vrot.slane %v640_v31, %v2357_v42 }
 0x1aa   : > { %v664_v54 = vpop.xlane.xlu1 %663 }
 0x1ab   : > { %v910_v52 = vsel %vm909_vm4, %v908_v16, %v903_v57  ;;  %v968_v5 = vrot.slane %v664_v54, %v2357_v42 }
 0x1ac   : > { %v917_v32 = vsel %vm916_vm5, %v915_v45, %v910_v52  ;;  %v656_v61 = vpop.xlane.xlu0 %655 }
 0x1ad   : > { %v1052_v3 = vsel %vm1051_vm6, %v936_v56, %v917_v32  ;;  %v949_v22 = vrot.slane %v656_v61, %v2357_v42 }
 0x1ae   : > { %v672_v40 = vpop.xlane.xlu1 %671 }
 0x1af   : > { %v950_v2 = vsel %vm909_vm4, %v949_v22, %v945_v14  ;;  %v987_v34 = vrot.slane %v672_v40, %v2357_v42 }
 0x1b0   : > { %v955_v44 = vsel %vm916_vm5, %v954_v18, %v950_v2  ;;  %v662_v7 = vpop.xlane.xlu0 %661 }
 0x1b1   : > { %v988_v4 = vsel %vm909_vm4, %v987_v34, %v983_v55  ;;  %v963_v19 = vrot.slane %v662_v7, %v2340_v13  ;;  %v1054_v1 = vsel %vm1053_vm7, %v955_v44, %v1052_v3 }
 0x1b2   : > { %v993_v51 = vsel %vm916_vm5, %v992_v6, %v988_v4  ;;  %v678_v38 = vpop.xlane.xlu1 %677 }
 0x1b3   : > { %v964_v12 = vsel %vm902_vm3, %v963_v19, %v959_v9  ;;  %v1001_v21 = vrot.slane %v678_v38, %v2340_v13 }
 0x1b4   : > { %v969_v48 = vsel %vm909_vm4, %v968_v5, %v964_v12  ;;  %v666_v8 = vpop.xlane.xlu0 %665  ;;  %v1103_v12 = vadd.s32 4294967256, %v2332_v23 }
 0x1b5   : > { %v973_v41 = vrot.slane %v666_v8, %v2360_v50 }
 0x1b6   : > { %v680_v60 = vpop.xlane.xlu1 %679 }
 0x1b7   : > { %v974_v36 = vsel %vm916_vm5, %v973_v41, %v969_v48  ;;  %v1006_v58 = vrot.slane %v680_v60, %v2357_v42  ;;  %v1110_v48 = vadd.s32 4294967248, %v2332_v23  ;;  %v1117_v60 = vadd.s32 4294967240, %v2332_v23 }
 0x1b8   : > { %v1056_v0 = vsel %vm1055_vm8, %v974_v36, %v1054_v1  ;;  %v676_v43 = vpop.xlane.xlu0 %675 }
 0x1b9   : > { %v997_v26 = vrot.slane %v676_v43, %v2337_v47  ;;  %v1058_v57 = vsel %vm1057_vm9, %v993_v51, %v1056_v0  ;;  %v1098_v51 = vadd.s32 4294967264, %v2332_v23  ;;  %v2432_v0 = vsub.s32 %v1103_v12, %v1900_v28 }
 0x1ba   : > { %v686_v59 = vpop.xlane.xlu1 %685  ;;  %v2435_v43 = vsub.s32 %v1110_v48, %v1900_v28 }
 0x1bb   : > { %v1002_v24 = vsel %vm902_vm3, %v1001_v21, %v997_v26  ;;  %v1020_v15 = vrot.slane %v686_v59, %v2340_v13  ;;  %v2428_v41 = vsub.s32 %v1098_v51, %v1900_v28 }
 0x1bc   : > { %v684_v62 = vpop.xlane.xlu0 %683  ;;  %v1007_v25 = vsel %vm909_vm4, %v1006_v58, %v1002_v24 }
 0x1bd   : > { %v1016_v30 = vrot.slane %v684_v62, %v2337_v47 }
 0x1be   : > { %v688_v14 = vpop.xlane.xlu1 %687 }
 0x1bf   : > { %v1021_v49 = vsel %vm902_vm3, %v1020_v15, %v1016_v30  ;;  %v1025_v33 = vrot.slane %v688_v14, %v2357_v42 }
 0x1c0   : > { %v682_v27 = vpop.xlane.xlu0 %681 }
 0x1c1   : > { %v1026_v35 = vsel %vm909_vm4, %v1025_v33, %v1021_v49  ;;  %v1011_v17 = vrot.slane %v682_v27, %v2360_v50 }
 0x1c2   : > { %v694_v55 = vpop.xlane.xlu1 %693 }
 0x1c3   : > { %v1012_v39 = vsel %vm916_vm5, %v1011_v17, %v1007_v25  ;;  %v1039_v56 = vrot.slane %v694_v55, %v2340_v13 }
 0x1c4   : > { %v1060_v29 = vsel %vm1059_vm10, %v1012_v39, %v1058_v57  ;;  %v690_v37 = vpop.xlane.xlu0 %689  ;;  %v2439_v57 = vsub.s32 %v1117_v60, %v1900_v28 }
 0x1c5   : > { %v1030_v10 = vrot.slane %v690_v37, %v2360_v50 }
 0x1c6   : > { %v696_v63 = vpop.xlane.xlu1 %695 }
 0x1c7   : > { %v1031_v46 = vsel %vm916_vm5, %v1030_v10, %v1026_v35  ;;  %v1044_v31 = vrot.slane %v696_v63, %v2357_v42 }
 0x1c8   : > { %v692_v20 = vpop.xlane.xlu0 %691  ;;  %v2405_v11 = vsel %vm1061_vm11, %v1031_v46, %v1060_v29 }
 0x1c9   : > { %v1035_v53 = vrot.slane %v692_v20, %v2337_v47 }
 0x1ca   : > { %v798_v16 = vpop.xlane.xlu1 %797 }
 0x1cb   : > { %v1040_v45 = vsel %vm902_vm3, %v1039_v56, %v1035_v53  ;;  %v1107_v62 = vrot.slane %v798_v16, %v2432_v0 }
 0x1cc   : > { %v796_v54 = vpop.xlane.xlu0 %795  ;;  %v2412_v52 = vsel %vm909_vm4, %v1044_v31, %v1040_v45 }
 0x1cd   : > { %v1102_v26 = vrot.slane %v796_v54, %v2428_v41 }
 0x1ce   : > { %v806_v32 = vpop.xlane.xlu1 %805 }
 0x1cf   : > { %v1131_v28 = vrot.slane %v806_v32, %v2432_v0  ;;  %v1109_v35 = vsel %vm1108_vm12, %v1107_v62, %v1102_v26 }
 0x1d0   : > { %v804_v61 = vpop.xlane.xlu0 %803 }
 0x1d1   : > { %v1127_v58 = vrot.slane %v804_v61, %v2428_v41 }
 0x1d2   : > { %v814_v3 = vpop.xlane.xlu1 %813 }
 0x1d3   : > { %v1150_v14 = vrot.slane %v814_v3, %v2432_v0  ;;  %v1132_v29 = vsel %vm1108_vm12, %v1131_v28, %v1127_v58 }
 0x1d4   : > { %v812_v22 = vpop.xlane.xlu0 %811 }
 0x1d5   : > { %v1146_v59 = vrot.slane %v812_v22, %v2428_v41 }
 0x1d6   : > { %v822_v18 = vpop.xlane.xlu1 %821 }
 0x1d7   : > { %v1169_v49 = vrot.slane %v822_v18, %v2432_v0  ;;  %v1151_v37 = vsel %vm1108_vm12, %v1150_v14, %v1146_v59 }
 0x1d8   : > { %v820_v40 = vpop.xlane.xlu0 %819 }
 0x1d9   : > { %v1165_v23 = vrot.slane %v820_v40, %v2428_v41 }
 0x1da   : > { %v830_v2 = vpop.xlane.xlu1 %829 }
 0x1db   : > { %v1188_v17 = vrot.slane %v830_v2, %v2432_v0  ;;  %v1170_v10 = vsel %vm1108_vm12, %v1169_v49, %v1165_v23 }
 0x1dc   : > { %v828_v34 = vpop.xlane.xlu0 %827 }
 0x1dd   : > { %v1184_v25 = vrot.slane %v828_v34, %v2428_v41 }
 0x1de   : > { %v838_v13 = vpop.xlane.xlu1 %837 }
 0x1df   : > { %v1207_v55 = vrot.slane %v838_v13, %v2432_v0  ;;  %v1189_v20 = vsel %vm1108_vm12, %v1188_v17, %v1184_v25 }
 0x1e0   : > { %v836_v6 = vpop.xlane.xlu0 %835 }
 0x1e1   : > { %v1203_v15 = vrot.slane %v836_v6, %v2428_v41 }
 0x1e2   : > { %v2414_v47 = vpop.xlane.xlu1 %845 }
 0x1e3   : > { %v1208_v56 = vsel %vm1108_vm12, %v1207_v55, %v1203_v15 }
 0x1e4   : > { %v2416_v42 = vpop.xlane.xlu0 %843 }
 0x1e5   : > { %v1222_v3 = vrot.slane %v2416_v42, %v2428_v41 }
 0x1e6   : > { %v2418_v44 = vpop.xlane.xlu1 %853 }
 0x1e7   : > { %v1245_v62 = vrot.slane %v2418_v44, %v2432_v0 }
 0x1e8   : > { %v2420_v7 = vpop.xlane.xlu0 %851 }
 0x1ea   : > { %v802_v9 = vpop.xlane.xlu1 %801 }
 0x1eb   : > { %v1121_v16 = vrot.slane %v802_v9, %v2439_v57 }
 0x1ec   : > { %v810_v4 = vpop.xlane.xlu0 %809 }
 0x1ed   : > { %v1141_v45 = vrot.slane %v810_v4, %v2439_v57 }
 0x1ee   : > { %v808_v19 = vpop.xlane.xlu1 %807 }
 0x1ef   : > { %v1136_v30 = vrot.slane %v808_v19, %v2435_v43 }
 0x1f0   : > { %v818_v1 = vpop.xlane.xlu0 %817 }
 0x1f1   : > { %v1137_v53 = vsel %vm1115_vm13, %v1136_v30, %v1132_v29  ;;  %v1160_v22 = vrot.slane %v818_v1, %v2439_v57 }
 0x1f2   : > { %v816_v5 = vpop.xlane.xlu1 %815  ;;  %v1142_v2 = vsel %vm1122_vm14, %v1141_v45, %v1137_v53 }
 0x1f3   : > { %v1155_v33 = vrot.slane %v816_v5, %v2435_v43  ;;  %v1226_v5 = vrot.slane %v2414_v47, %v2432_v0 }
 0x1f4   : > { %v2423_v38 = vpop.xlane.xlu0 %825 }
 0x1f5   : > { %v1156_v54 = vsel %vm1115_vm13, %v1155_v33, %v1151_v37  ;;  %v1179_v34 = vrot.slane %v2423_v38, %v2439_v57  ;;  %v1227_v26 = vsel %vm1108_vm12, %v1226_v5, %v1222_v3 }
 0x1f6   : > { %v824_v8 = vpop.xlane.xlu1 %823  ;;  %v1161_v4 = vsel %vm1122_vm14, %v1160_v22, %v1156_v54 }
 0x1f7   : > { %v1174_v39 = vrot.slane %v824_v8, %v2435_v43  ;;  %v1241_v8 = vrot.slane %v2420_v7, %v2428_v41 }
 0x1f8   : > { %v834_v36 = vpop.xlane.xlu0 %833 }
 0x1f9   : > { %v1175_v18 = vsel %vm1115_vm13, %v1174_v39, %v1170_v10  ;;  %v1198_v42 = vrot.slane %v834_v36, %v2439_v57  ;;  %v1246_v30 = vsel %vm1108_vm12, %v1245_v62, %v1241_v8 }
 0x1fa   : > { %v832_v21 = vpop.xlane.xlu1 %831  ;;  %v1180_v51 = vsel %vm1122_vm14, %v1179_v34, %v1175_v18 }
 0x1fb   : > { %v1193_v63 = vrot.slane %v832_v21, %v2435_v43 }
 0x1fc   : > { %v842_v24 = vpop.xlane.xlu0 %841 }
 0x1fd   : > { %v1194_v13 = vsel %vm1115_vm13, %v1193_v63, %v1189_v20  ;;  %v1217_v36 = vrot.slane %v842_v24, %v2439_v57 }
 0x1fe   : > { %v840_v27 = vpop.xlane.xlu1 %839  ;;  %v1199_v60 = vsel %vm1122_vm14, %v1198_v42, %v1194_v13 }
 0x1ff   : > { %v1212_v32 = vrot.slane %v840_v27, %v2435_v43 }
 0x200   : > { %v800_v46 = vpop.xlane.xlu0 %799 }
 0x201   : > { %v1114_v31 = vrot.slane %v800_v46, %v2435_v43  ;;  %v1213_v38 = vsel %vm1115_vm13, %v1212_v32, %v1208_v56 }
 0x202   : > { %v848_v61 = vpop.xlane.xlu1 %847  ;;  %v1218_v7 = vsel %vm1122_vm14, %v1217_v36, %v1213_v38 }
 0x203   : > { %v1116_v40 = vsel %vm1115_vm13, %v1114_v31, %v1109_v35  ;;  %v1231_v1 = vrot.slane %v848_v61, %v2435_v43 }
 0x204   : > { %v1123_v6 = vsel %vm1122_vm14, %v1121_v16, %v1116_v40  ;;  %v850_v9 = vpop.xlane.xlu0 %849 }
 0x205   : > { %v1257_v19 = vsel %vm1051_vm6, %v1142_v2, %v1123_v6  ;;  %v1236_v47 = vrot.slane %v850_v9, %v2439_v57  ;;  %v1232_v41 = vsel %vm1115_vm13, %v1231_v1, %v1227_v26 }
 0x206   : > { %v1258_v12 = vsel %vm1053_vm7, %v1161_v4, %v1257_v19  ;;  %v856_v48 = vpop.xlane.xlu1 %855 }
 0x207   : > { %v1259_v21 = vsel %vm1055_vm8, %v1180_v51, %v1258_v12  ;;  %v1250_v58 = vrot.slane %v856_v48, %v2435_v43  ;;  %v1237_v14 = vsel %vm1122_vm14, %v1236_v47, %v1232_v41 }
 0x208   : > { %v698_v59 = vpop.xlane.xlu0 %697  ;;  %v1260_v23 = vsel %vm1057_vm9, %v1199_v60, %v1259_v21 }
 0x209   : > { %v1049_v24 = vrot.slane %v698_v59, %v2360_v50  ;;  %v1261_v15 = vsel %vm1059_vm10, %v1218_v7, %v1260_v23  ;;  %v1251_v44 = vsel %vm1115_vm13, %v1250_v58, %v1246_v30 }
 0x20a   : > { %v858_v25 = vpop.xlane.xlu1 %857  ;;  %v1262_v50 = vsel %vm1061_vm11, %v1237_v14, %v1261_v15 }
 0x20b   : > { %v1050_v43 = vsel %vm916_vm5, %v1049_v24, %v2412_v52  ;;  %v1255_v28 = vrot.slane %v858_v25, %v2439_v57 }
 0x20c   : > { %v1064_v0 = vsel %vm1063_vm15, %v1050_v43, %v2405_v11 }
 0x20d   : > { %v1256_v49 = vsel %vm1122_vm14, %v1255_v28, %v1251_v44 }
 0x20e   : > { %v1263_v33 = vsel %vm1063_vm15, %v1256_v49, %v1262_v50 }
 0x20f   : > { %v1265_v27 = vsel %vm235_vm2, %v1064_v0, %v1263_v33 }
 0x210   : > { %v1267_v52 = vsel %vm1266_vm0, %v1265_v27, -inf }
 0x211   : > { %1268 = vmax.xlane.f32.xlu0 %v1267_v52 }
 0x29e   : > { %v1269_v57 = vpop.xlane.xlu0 %1268 }
 0x29f   : > { %v1270_v35 = vsub.f32 %v1265_v27, %v1269_v57 }
 0x2a1   : > { %v1271_v17 = vmul.f32 1.442695, %v1270_v35 }
 0x2a3   : > { %1712 = vpow2.f32 %v1271_v17 }
 0x2ad   : > { %v1713_v55 = vpop.eup %1712 }
 0x2ae   : > { %v1273_v11 = vsel %vm1266_vm0, %v1713_v55, 0.0 }
 0x2af   : > { %1274 = vadd.xlane.f32.xlu1 %v1273_v11 }
 0x33c   : > { %v1275_v39 = vpop.xlane.xlu1 %1274 }
 0x33d   : > { %1714 = vrcp.f32 %v1275_v39 }
 0x347   : > { %v1715_v29 = vpop.eup %1714 }
 0x348   : > { %v1277_v37 = vmul.f32 %v1715_v29, %v1713_v55 }
 0x34a   : > { %1516 = vmatmul.mubr.msk.f32.vlgmr.msra.gmra.mrb[2].mxu1 %vm1266_vm0, %v1277_v37 }
 0x41d   : > { %v1347_v10 = vpop.f32.mrb[2].mxu1 }
 0x41e   : > { %1351 = vst.msk [vmem:[%s217_s13] sm:$0xff] %vm235_vm2, %v1347_v10  ;;  %v1517_v63 = vpop.f32.mrb[3].mxu1 }
 0x41f   : > { %1729 = shalt.err (!%p1726_p3)
}
 0x420   : > { %s1730_s6 = scalar_lea.hbm %s2522_s17, 128  ;;  %s1734_s9 = scalar_lea.hbm %s2570_s5, 256 }
 0x421   : > { %p1731_p4 = scmp.ne.s32.totalorder %s2522_s17, %s1730_s6  ;;  %p1735_p9 = scmp.lt.u32.totalorder %s2522_s17, %s2570_s5 }
 0x422   : > { %p1736_p10 = scmp.lt.u32.totalorder %s1734_s9, %s1730_s6  ;;  %p1738_p12 = scmp.lt.u32.totalorder %s1730_s6, %s2522_s17 }
 0x423   : > { %p1732_p7 = pnand %p1731_p4, %p1853_p5 }
 0x424   : > { %p1737_p11 = por %p1736_p10, %p1735_p9 }
 0x425   : > { %p1733_p8 = pneg %p1732_p7 }
 0x426   : > { %p1739_p13 = por %p1738_p12, %p1737_p11 }
 0x428   : > { %p1740_p0 = pnand %p1739_p13, %p1733_p8 }
 0x42a   : > { %1743 = shalt.err (!%p1740_p0)
}
 0x42b   : > { %1541 = dma.vmem_to_hbm [thread:$0]  (%p1853_p5), %s2524_s14, 128, %s2522_s17, %s1353_s23  }
 0x42c PF: > { %p1547_p1 = scmp.ge.s32.totalorder %s1778_s21, 2  ;;  %s1378_s12 = sand.u32 1, %s1766_s18  }
 0x42d   : > { %s1379_s13 = scalar_lea.sflag [#allocation3], %s1378_s12 }
 0x42e   : > { %p1544_p2 = pnand %p1547_p1, %p1857_p6 }
 0x430   : > { %1761 = dma.done.wait (!%p1544_p2), %s1379_s13, 128  }
 0x431   : > { %1763 = vsyncadd (!%p1544_p2), %s1379_s13, 4294967168  ;;  %p15_p3 = scmp.ge.s32.totalorder %s1840_s24, 4   ;;  %s2573_s18 = smov %s1770_s19 }
 0x432   : > { %s2574_s19 = smov %s1774_s20  ;;  %s2575_s20 = smov %s1851_s27 }
 0x433   : > { %s2576_s21 = smov %s1840_s24  ;;  %17 = sbr.rel (!%p15_p3) target bundleno = 3 (0x3), region = 75 }
 0x43a   :  { %1384 = vsyncpa [#allocation3], 1 }
 0x43b   :  { %1386 = vsyncpa [#allocation3 + $0x1], 1 }

</bundles_post_ra>
